<compile_context>
chip_gen: v5e
topology: v5e:2x2
jax: 0.10.0
libtpu: 0.0.40
codegen_flags: <defaults>
</compile_context>

<pallas_src>
import functools
import math

import jax
import jax.numpy as jnp
import numpy as np
from jax import lax
from jax.experimental import pallas as pl
from jax.experimental.pallas import tpu as pltpu


# ----------------------------- in-kernel helpers -----------------------------

def _gelu_tanh(x):
    # tanh-approx GELU: jnp.tanh lowers to the EUP (its own VLIW slot), which is
    # otherwise idle in the FFN epilogue. |exact - tanh| <= ~1e-3 absolute.
    c = math.sqrt(2.0 / math.pi)
    return 0.5 * x * (1.0 + jnp.tanh(c * (x + 0.044715 * x * x * x)))


def _layer_norm(x, gamma, beta, eps=1e-5):
    mu = jnp.mean(x, axis=-1, keepdims=True)
    var = jnp.mean((x - mu) * (x - mu), axis=-1, keepdims=True)
    return (x - mu) * lax.rsqrt(var + eps) * gamma + beta


# --------------------------------- kernel ------------------------------------

def encoder_block_kernel(
    x_ref, mask_ref,
    wq_ref, bq_ref, wk_ref, bk_ref, wv_ref, bv_ref,
    wz_ref, bz_ref,
    g1_ref, bt1_ref,
    w1_ref, b1_ref, w2_ref, b2_ref,
    g2_ref, bt2_ref,
    out_ref,
    *, head, q_k_size, v_size,
):
    Bt, S, E = x_ref.shape
    H, Dk, Dv = head, q_k_size, v_size
    R = Bt * S
    scale = 1.0 / math.sqrt(Dk)

    x = x_ref[...].reshape(R, E)                 # f32 residual path
    x_bf = x.astype(jnp.bfloat16)                # bf16 matmul operand

    # Additive attention bias computed once per grid step (mask is 0/1 int8;
    # int8 keeps HBM/DMA traffic 4x smaller than an f32 mask).
    bias = mask_ref[...].astype(jnp.float32) * jnp.float32(-1e9)   # (Bt, S, S)

    # ---- fused QKV projections (all heads at once), bf16 MXU / f32 accumulate.
    # 1/sqrt(Dk) folded into q right after the bias add (cheaper than scaling
    # the (S, S) score tensor); q/k/v cast to bf16 exactly once.
    q = (jnp.dot(x_bf, wq_ref[...], preferred_element_type=jnp.float32)
         + bq_ref[...]) * scale
    k = jnp.dot(x_bf, wk_ref[...], preferred_element_type=jnp.float32) + bk_ref[...]
    v = jnp.dot(x_bf, wv_ref[...], preferred_element_type=jnp.float32) + bv_ref[...]
    q = q.astype(jnp.bfloat16)
    k = k.astype(jnp.bfloat16)
    v = v.astype(jnp.bfloat16)

    def to_head_batch(t, D):
        # (R, H*D) with heads along lanes -> (H*Bt, S, D) with heads merged
        # into the leading batch dim (index = h*Bt + b) of one contraction.
        parts = [t[:, h * D:(h + 1) * D].reshape(Bt, S, D) for h in range(H)]
        return jnp.concatenate(parts, axis=0)

    qb = to_head_batch(q, Dk)                    # (H*Bt, S, Dk) bf16
    kb = to_head_batch(k, Dk)
    vb = to_head_batch(v, Dv)

    # ---- all-heads batched attention: one QK^T, one softmax, one PV.
    s = jnp.einsum("bqd,bkd->bqk", qb, kb,
                   preferred_element_type=jnp.float32)           # (H*Bt, S, S)
    s4 = s.reshape(H, Bt, S, S) + bias                           # mask bias, one add
    m = jnp.max(s4, axis=-1, keepdims=True)
    e = jnp.exp(s4 - m)                                          # f32
    l = jnp.sum(e, axis=-1, keepdims=True)                       # (H, Bt, S, 1)

    z = jnp.einsum("bqk,bkd->bqd",
                   e.reshape(H * Bt, S, S).astype(jnp.bfloat16), vb,
                   preferred_element_type=jnp.float32)           # (H*Bt, S, Dv)
    # Deferred softmax normalization: scale the (S, Dv) outputs on the EUP
    # instead of dividing the (S, S) probability tensor on the VPU.
    z = z * pl.reciprocal(l.reshape(H * Bt, S, 1), approx=True)

    # ---- back to row-major (R, H*Dv) and one wide output projection.
    z_cat = jnp.concatenate(
        [z[h * Bt:(h + 1) * Bt].reshape(R, Dv) for h in range(H)], axis=-1)
    z_proj = jnp.dot(z_cat.astype(jnp.bfloat16), wz_ref[...],
                     preferred_element_type=jnp.float32) + bz_ref[...]

    # addnorm1: LayerNorm(z + x)   (f32 residual path)
    out1 = _layer_norm(z_proj + x, g1_ref[...], bt1_ref[...])

    # feedforward MLP: Linear -> GELU -> (Dropout=id) -> Linear -> (Dropout=id)
    h1 = jnp.dot(out1.astype(jnp.bfloat16), w1_ref[...],
                 preferred_element_type=jnp.float32) + b1_ref[...]
    h1 = _gelu_tanh(h1)
    ffn = jnp.dot(h1.astype(jnp.bfloat16), w2_ref[...],
                  preferred_element_type=jnp.float32) + b2_ref[...]

    # addnorm2: LayerNorm(ffn + out1)
    out_ref[...] = _layer_norm(ffn + out1, g2_ref[...], bt2_ref[...]).reshape(Bt, S, E)


# --------------------------------- wrapper -----------------------------------

def _tpu_vmem_capacity_bytes():
    try:
        info = pltpu.get_tpu_info()
        return int(getattr(info, "vmem_capacity_bytes", 128 * 1024 * 1024))
    except Exception:
        return 128 * 1024 * 1024


def _pick_batch_tile(B, S, target_rows, min_grid_steps=2):
    """Largest divisor of B with Bt*S <= target_rows that keeps >= 2 grid steps."""
    best = 1
    for bt in range(1, B + 1):
        if B % bt:
            continue
        if bt * S > target_rows:
            continue
        if bt > 1 and B // bt < min_grid_steps:
            continue
        best = bt
    return best


def encoder_block(x, attn_mask, params, *, head, q_k_size, v_size, batch_tile=None):
    B, S, E = x.shape

    vmem_cap = _tpu_vmem_capacity_bytes()
    # Generation-aware tiling: v7x (64 MiB VMEM, 2 TensorCores) -> smaller tiles
    # and >= 2 parallel grid steps; v5e/v6e (128 MiB VMEM) -> bigger tiles that
    # amortize the ~0.35 us/step pipeline overhead.
    target_rows = 256 if vmem_cap <= 64 * 1024 * 1024 else 512
    if batch_tile is None:
        batch_tile = _pick_batch_tile(B, S, target_rows=target_rows)
    assert B % batch_tile == 0
    Bt = batch_tile

    # Leave headroom for double-buffered x/mask/out tiles and compiler scratch:
    # ~40 MiB of 64 MiB on v7x, ~96 MiB of 128 MiB on v5e/v6e.
    vmem_limit = max(32 * 1024 * 1024,
                     min(vmem_cap * 3 // 4, vmem_cap - 24 * 1024 * 1024))

    # int8 mask (values 0/1): 4x less HBM traffic / VMEM than an f32 mask.
    mask_i8 = (attn_mask != 0).astype(jnp.int8)

    def bf16(w):
        return w.astype(jnp.bfloat16)

    # Matmul weights in bf16 (cast once, halves weight DMA); biases / LN in f32.
    ordered = [
        bf16(params["wq"]), params["bq"], bf16(params["wk"]), params["bk"],
        bf16(params["wv"]), params["bv"], bf16(params["wz"]), params["bz"],
        params["ln1_g"], params["ln1_b"],
        bf16(params["w1"]), params["b1"], bf16(params["w2"]), params["b2"],
        params["ln2_g"], params["ln2_b"],
    ]

    def const_spec(arr):
        # Constant (grid-invariant) operands: single-buffered -> halves the
        # resident weight VMEM footprint (no double-buffering needed).
        nd = arr.ndim
        return pl.BlockSpec(arr.shape, lambda b, _nd=nd: (0,) * _nd,
                            pipeline_mode=pl.Buffered(1))

    grid_spec = pltpu.PrefetchScalarGridSpec(
        num_scalar_prefetch=0,
        grid=(B // Bt,),
        in_specs=[pl.BlockSpec((Bt, S, E), lambda b: (b, 0, 0)),
                  pl.BlockSpec((Bt, S, S), lambda b: (b, 0, 0))]
                 + [const_spec(w) for w in ordered],
        out_specs=pl.BlockSpec((Bt, S, E), lambda b: (b, 0, 0)),
    )

    kernel = functools.partial(encoder_block_kernel, head=head,
                               q_k_size=q_k_size, v_size=v_size)

    return pl.pallas_call(
        kernel,
        out_shape=jax.ShapeDtypeStruct((B, S, E), jnp.float32),
        grid_spec=grid_spec,
        compiler_params=pltpu.CompilerParams(
            dimension_semantics=("parallel",),
            vmem_limit_bytes=vmem_limit,
        ),
    )(x, mask_i8, *ordered)


# ----------------------------- pure-JAX reference ----------------------------

def encoder_block_ref(x, attn_mask, params, *, head, q_k_size, v_size):
    B, S, E = x.shape
    H, Dk, Dv = head, q_k_size, v_size

    def ln(v, g, b, eps=1e-5):
        mu = jnp.mean(v, axis=-1, keepdims=True)
        var = jnp.mean((v - mu) ** 2, axis=-1, keepdims=True)
        return (v - mu) / jnp.sqrt(var + eps) * g + b

    q = (x @ params["wq"] + params["bq"]).reshape(B, S, H, Dk)
    k = (x @ params["wk"] + params["bk"]).reshape(B, S, H, Dk)
    v = (x @ params["wv"] + params["bv"]).reshape(B, S, H, Dv)
    s = jnp.einsum("bqhd,bkhd->bhqk", q, k) / math.sqrt(Dk)
    s = jnp.where(attn_mask[:, None, :, :] != 0, -1e9, s)
    p = jax.nn.softmax(s, axis=-1)
    z = jnp.einsum("bhqk,bkhd->bqhd", p, v).reshape(B, S, H * Dv)
    z_proj = z @ params["wz"] + params["bz"]
    out1 = ln(z_proj + x, params["ln1_g"], params["ln1_b"])
    h1 = jax.nn.gelu(out1 @ params["w1"] + params["b1"], approximate=False)
    ffn = h1 @ params["w2"] + params["b2"]
    return ln(ffn + out1, params["ln2_g"], params["ln2_b"])


# ----------------------------------- main ------------------------------------

if __name__ == "__main__":
    B, S = 2, 8
    emb_size, q_k_size, v_size, f_size, head = 32, 16, 16, 64, 4

    key = jax.random.PRNGKey(0)
    keys = jax.random.split(key, 18)

    def nrm(k, shape, scale=0.05):
        return (scale * jax.random.normal(k, shape)).astype(jnp.float32)

    # Head-fused weight layout: wq/wk: (E, H*Dk), wv: (E, H*Dv), wz: (H*Dv, E)
    # (equivalent to the per-head torch Linear weights concatenated along heads).
    params = {
        "wq": nrm(keys[0], (emb_size, head * q_k_size)),
        "bq": nrm(keys[1], (1, head * q_k_size)),
        "wk": nrm(keys[2], (emb_size, head * q_k_size)),
        "bk": nrm(keys[3], (1, head * q_k_size)),
        "wv": nrm(keys[4], (emb_size, head * v_size)),
        "bv": nrm(keys[5], (1, head * v_size)),
        "wz": nrm(keys[6], (head * v_size, emb_size)),
        "bz": nrm(keys[7], (1, emb_size)),
        "ln1_g": (1.0 + 0.1 * jax.random.normal(keys[8], (1, emb_size))).astype(jnp.float32),
        "ln1_b": nrm(keys[9], (1, emb_size), 0.1),
        "w1": nrm(keys[10], (emb_size, f_size)),
        "b1": nrm(keys[11], (1, f_size)),
        "w2": nrm(keys[12], (f_size, emb_size)),
        "b2": nrm(keys[13], (1, emb_size)),
        "ln2_g": (1.0 + 0.1 * jax.random.normal(keys[14], (1, emb_size))).astype(jnp.float32),
        "ln2_b": nrm(keys[15], (1, emb_size), 0.1),
    }

    x = jax.random.normal(keys[16], (B, S, emb_size), dtype=jnp.float32)
    # Causal-style mask: 1.0 where attention is disallowed.
    causal = jnp.triu(jnp.ones((S, S), dtype=jnp.float32), k=1)
    attn_mask = jnp.broadcast_to(causal, (B, S, S))

    out = encoder_block(x, attn_mask, params,
                        head=head, q_k_size=q_k_size, v_size=v_size)
    out = jax.block_until_ready(out)

    ref = encoder_block_ref(x, attn_mask, params,
                            head=head, q_k_size=q_k_size, v_size=v_size)
    # bf16 matmul operands + tanh-GELU + approx reciprocal => slightly looser
    # tolerance than an all-f32 version (f32 accumulation keeps errors small;
    # the f32 residual/LayerNorm path carries the dominant signal exactly).
    np.testing.assert_allclose(np.asarray(out), np.asarray(ref), rtol=2e-2, atol=2e-2)

    print("KERNEL_OK")
</pallas_src>

<mosaic_0001>
module attributes {stable_mosaic.version = 11 : i64} {
  func.func @encoder_block_kernel(%arg0: i32, %arg1: memref<1x8x32xf32, #tpu.memory_space<vmem>>, %arg2: memref<1x8x8xi8, #tpu.memory_space<vmem>>, %arg3: memref<32x64xbf16, #tpu.memory_space<vmem>>, %arg4: memref<1x64xf32, #tpu.memory_space<vmem>>, %arg5: memref<32x64xbf16, #tpu.memory_space<vmem>>, %arg6: memref<1x64xf32, #tpu.memory_space<vmem>>, %arg7: memref<32x64xbf16, #tpu.memory_space<vmem>>, %arg8: memref<1x64xf32, #tpu.memory_space<vmem>>, %arg9: memref<64x32xbf16, #tpu.memory_space<vmem>>, %arg10: memref<1x32xf32, #tpu.memory_space<vmem>>, %arg11: memref<1x32xf32, #tpu.memory_space<vmem>>, %arg12: memref<1x32xf32, #tpu.memory_space<vmem>>, %arg13: memref<32x64xbf16, #tpu.memory_space<vmem>>, %arg14: memref<1x64xf32, #tpu.memory_space<vmem>>, %arg15: memref<64x32xbf16, #tpu.memory_space<vmem>>, %arg16: memref<1x32xf32, #tpu.memory_space<vmem>>, %arg17: memref<1x32xf32, #tpu.memory_space<vmem>>, %arg18: memref<1x32xf32, #tpu.memory_space<vmem>>, %arg19: memref<1x8x32xf32, #tpu.memory_space<vmem>>) attributes {dimension_semantics = [#tpu.dimension_semantics<parallel>], iteration_bounds = array<i64: 2>, scalar_prefetch = 0 : i64, scratch_operands = 0 : i64, tpu.core_type = #tpu.core_type<tc>, window_params = [{transform_indices = @transform_0, window_bounds = array<i64: 1, 8, 32>}, {transform_indices = @transform_1, window_bounds = array<i64: 1, 8, 8>}, {pipeline_mode = #tpu.pipeline_mode<synchronous>, transform_indices = @transform_2, window_bounds = array<i64: 32, 64>}, {pipeline_mode = #tpu.pipeline_mode<synchronous>, transform_indices = @transform_3, window_bounds = array<i64: 1, 64>}, {pipeline_mode = #tpu.pipeline_mode<synchronous>, transform_indices = @transform_4, window_bounds = array<i64: 32, 64>}, {pipeline_mode = #tpu.pipeline_mode<synchronous>, transform_indices = @transform_5, window_bounds = array<i64: 1, 64>}, {pipeline_mode = #tpu.pipeline_mode<synchronous>, transform_indices = @transform_6, window_bounds = array<i64: 32, 64>}, {pipeline_mode = #tpu.pipeline_mode<synchronous>, transform_indices = @transform_7, window_bounds = array<i64: 1, 64>}, {pipeline_mode = #tpu.pipeline_mode<synchronous>, transform_indices = @transform_8, window_bounds = array<i64: 64, 32>}, {pipeline_mode = #tpu.pipeline_mode<synchronous>, transform_indices = @transform_9, window_bounds = array<i64: 1, 32>}, {pipeline_mode = #tpu.pipeline_mode<synchronous>, transform_indices = @transform_10, window_bounds = array<i64: 1, 32>}, {pipeline_mode = #tpu.pipeline_mode<synchronous>, transform_indices = @transform_11, window_bounds = array<i64: 1, 32>}, {pipeline_mode = #tpu.pipeline_mode<synchronous>, transform_indices = @transform_12, window_bounds = array<i64: 32, 64>}, {pipeline_mode = #tpu.pipeline_mode<synchronous>, transform_indices = @transform_13, window_bounds = array<i64: 1, 64>}, {pipeline_mode = #tpu.pipeline_mode<synchronous>, transform_indices = @transform_14, window_bounds = array<i64: 64, 32>}, {pipeline_mode = #tpu.pipeline_mode<synchronous>, transform_indices = @transform_15, window_bounds = array<i64: 1, 32>}, {pipeline_mode = #tpu.pipeline_mode<synchronous>, transform_indices = @transform_16, window_bounds = array<i64: 1, 32>}, {pipeline_mode = #tpu.pipeline_mode<synchronous>, transform_indices = @transform_17, window_bounds = array<i64: 1, 32>}, {transform_indices = @transform_18, window_bounds = array<i64: 1, 8, 32>}]} {
    %c0 = arith.constant 0 : index
    %c0_0 = arith.constant 0 : index
    %c0_1 = arith.constant 0 : index
    %0 = vector.load %arg1[%c0, %c0_0, %c0_1] : memref<1x8x32xf32, #tpu.memory_space<vmem>>, vector<1x8x32xf32>
    %1 = vector.shape_cast %0 : vector<1x8x32xf32> to vector<8x32xf32>
    %2 = arith.truncf %1 : vector<8x32xf32> to vector<8x32xbf16>
    %c0_2 = arith.constant 0 : index
    %c0_3 = arith.constant 0 : index
    %c0_4 = arith.constant 0 : index
    %3 = vector.load %arg2[%c0_2, %c0_3, %c0_4] : memref<1x8x8xi8, #tpu.memory_space<vmem>>, vector<1x8x8xi8>
    %4 = arith.sitofp %3 : vector<1x8x8xi8> to vector<1x8x8xf32>
    %cst = arith.constant -1.000000e+09 : f32
    %5 = vector.broadcast %cst : f32 to vector<1x8x8xf32>
    %6 = arith.mulf %4, %5 : vector<1x8x8xf32>
    %c0_5 = arith.constant 0 : index
    %c0_6 = arith.constant 0 : index
    %7 = vector.load %arg3[%c0_5, %c0_6] : memref<32x64xbf16, #tpu.memory_space<vmem>>, vector<32x64xbf16>
    %cst_7 = arith.constant dense<0.000000e+00> : vector<8x64xf32>
    %8 = tpu.matmul %2, %7, %cst_7 {dimension_numbers = #tpu.dot_dimension_numbers<[1], [0], [0], [1], [0, 0, 1, 1], [], []>} : vector<8x32xbf16>, vector<32x64xbf16>, vector<8x64xf32> -> vector<8x64xf32>
    %c0_8 = arith.constant 0 : index
    %c0_9 = arith.constant 0 : index
    %9 = vector.load %arg4[%c0_8, %c0_9] : memref<1x64xf32, #tpu.memory_space<vmem>>, vector<1x64xf32>
    %10 = vector.broadcast %9 : vector<1x64xf32> to vector<8x64xf32>
    %11 = arith.addf %8, %10 : vector<8x64xf32>
    %cst_10 = arith.constant 2.500000e-01 : f32
    %12 = vector.broadcast %cst_10 : f32 to vector<8x64xf32>
    %13 = arith.mulf %11, %12 : vector<8x64xf32>
    %c0_11 = arith.constant 0 : index
    %c0_12 = arith.constant 0 : index
    %14 = vector.load %arg5[%c0_11, %c0_12] : memref<32x64xbf16, #tpu.memory_space<vmem>>, vector<32x64xbf16>
    %cst_13 = arith.constant dense<0.000000e+00> : vector<8x64xf32>
    %15 = tpu.matmul %2, %14, %cst_13 {dimension_numbers = #tpu.dot_dimension_numbers<[1], [0], [0], [1], [0, 0, 1, 1], [], []>} : vector<8x32xbf16>, vector<32x64xbf16>, vector<8x64xf32> -> vector<8x64xf32>
    %c0_14 = arith.constant 0 : index
    %c0_15 = arith.constant 0 : index
    %16 = vector.load %arg6[%c0_14, %c0_15] : memref<1x64xf32, #tpu.memory_space<vmem>>, vector<1x64xf32>
    %17 = vector.broadcast %16 : vector<1x64xf32> to vector<8x64xf32>
    %18 = arith.addf %15, %17 : vector<8x64xf32>
    %c0_16 = arith.constant 0 : index
    %c0_17 = arith.constant 0 : index
    %19 = vector.load %arg7[%c0_16, %c0_17] : memref<32x64xbf16, #tpu.memory_space<vmem>>, vector<32x64xbf16>
    %cst_18 = arith.constant dense<0.000000e+00> : vector<8x64xf32>
    %20 = tpu.matmul %2, %19, %cst_18 {dimension_numbers = #tpu.dot_dimension_numbers<[1], [0], [0], [1], [0, 0, 1, 1], [], []>} : vector<8x32xbf16>, vector<32x64xbf16>, vector<8x64xf32> -> vector<8x64xf32>
    %c0_19 = arith.constant 0 : index
    %c0_20 = arith.constant 0 : index
    %21 = vector.load %arg8[%c0_19, %c0_20] : memref<1x64xf32, #tpu.memory_space<vmem>>, vector<1x64xf32>
    %22 = vector.broadcast %21 : vector<1x64xf32> to vector<8x64xf32>
    %23 = arith.addf %20, %22 : vector<8x64xf32>
    %24 = arith.truncf %13 : vector<8x64xf32> to vector<8x64xbf16>
    %25 = arith.truncf %18 : vector<8x64xf32> to vector<8x64xbf16>
    %26 = arith.truncf %23 : vector<8x64xf32> to vector<8x64xbf16>
    %27 = vector.extract_strided_slice %24 {offsets = [0, 0], sizes = [8, 16], strides = [1, 1]} : vector<8x64xbf16> to vector<8x16xbf16>
    %28 = vector.shape_cast %27 : vector<8x16xbf16> to vector<1x8x16xbf16>
    %29 = vector.extract_strided_slice %24 {offsets = [0, 16], sizes = [8, 16], strides = [1, 1]} : vector<8x64xbf16> to vector<8x16xbf16>
    %30 = vector.shape_cast %29 : vector<8x16xbf16> to vector<1x8x16xbf16>
    %31 = vector.extract_strided_slice %24 {offsets = [0, 32], sizes = [8, 16], strides = [1, 1]} : vector<8x64xbf16> to vector<8x16xbf16>
    %32 = vector.shape_cast %31 : vector<8x16xbf16> to vector<1x8x16xbf16>
    %33 = vector.extract_strided_slice %24 {offsets = [0, 48], sizes = [8, 16], strides = [1, 1]} : vector<8x64xbf16> to vector<8x16xbf16>
    %34 = vector.shape_cast %33 : vector<8x16xbf16> to vector<1x8x16xbf16>
    %35 = tpu.concatenate %28, %30, %32, %34 in 0 : vector<1x8x16xbf16>, vector<1x8x16xbf16>, vector<1x8x16xbf16>, vector<1x8x16xbf16> -> vector<4x8x16xbf16>
    %36 = vector.extract_strided_slice %25 {offsets = [0, 0], sizes = [8, 16], strides = [1, 1]} : vector<8x64xbf16> to vector<8x16xbf16>
    %37 = vector.shape_cast %36 : vector<8x16xbf16> to vector<1x8x16xbf16>
    %38 = vector.extract_strided_slice %25 {offsets = [0, 16], sizes = [8, 16], strides = [1, 1]} : vector<8x64xbf16> to vector<8x16xbf16>
    %39 = vector.shape_cast %38 : vector<8x16xbf16> to vector<1x8x16xbf16>
    %40 = vector.extract_strided_slice %25 {offsets = [0, 32], sizes = [8, 16], strides = [1, 1]} : vector<8x64xbf16> to vector<8x16xbf16>
    %41 = vector.shape_cast %40 : vector<8x16xbf16> to vector<1x8x16xbf16>
    %42 = vector.extract_strided_slice %25 {offsets = [0, 48], sizes = [8, 16], strides = [1, 1]} : vector<8x64xbf16> to vector<8x16xbf16>
    %43 = vector.shape_cast %42 : vector<8x16xbf16> to vector<1x8x16xbf16>
    %44 = tpu.concatenate %37, %39, %41, %43 in 0 : vector<1x8x16xbf16>, vector<1x8x16xbf16>, vector<1x8x16xbf16>, vector<1x8x16xbf16> -> vector<4x8x16xbf16>
    %45 = vector.extract_strided_slice %26 {offsets = [0, 0], sizes = [8, 16], strides = [1, 1]} : vector<8x64xbf16> to vector<8x16xbf16>
    %46 = vector.shape_cast %45 : vector<8x16xbf16> to vector<1x8x16xbf16>
    %47 = vector.extract_strided_slice %26 {offsets = [0, 16], sizes = [8, 16], strides = [1, 1]} : vector<8x64xbf16> to vector<8x16xbf16>
    %48 = vector.shape_cast %47 : vector<8x16xbf16> to vector<1x8x16xbf16>
    %49 = vector.extract_strided_slice %26 {offsets = [0, 32], sizes = [8, 16], strides = [1, 1]} : vector<8x64xbf16> to vector<8x16xbf16>
    %50 = vector.shape_cast %49 : vector<8x16xbf16> to vector<1x8x16xbf16>
    %51 = vector.extract_strided_slice %26 {offsets = [0, 48], sizes = [8, 16], strides = [1, 1]} : vector<8x64xbf16> to vector<8x16xbf16>
    %52 = vector.shape_cast %51 : vector<8x16xbf16> to vector<1x8x16xbf16>
    %53 = tpu.concatenate %46, %48, %50, %52 in 0 : vector<1x8x16xbf16>, vector<1x8x16xbf16>, vector<1x8x16xbf16>, vector<1x8x16xbf16> -> vector<4x8x16xbf16>
    "tpu.trace_start"() <{level = 10 : i32, message = "bqd,bkd->bqk"}> : () -> ()
    %cst_21 = arith.constant dense<0.000000e+00> : vector<4x8x8xf32>
    %54 = tpu.matmul %35, %44, %cst_21 {dimension_numbers = #tpu.dot_dimension_numbers<[2], [2], [1], [1], [0, 0, 0, 1, 1, 1], [0], [0]>} : vector<4x8x16xbf16>, vector<4x8x16xbf16>, vector<4x8x8xf32> -> vector<4x8x8xf32>
    "tpu.trace_stop"() : () -> ()
    %55 = vector.shape_cast %54 : vector<4x8x8xf32> to vector<4x1x8x8xf32>
    %56 = vector.shape_cast %6 : vector<1x8x8xf32> to vector<1x1x8x8xf32>
    %57 = vector.broadcast %56 : vector<1x1x8x8xf32> to vector<4x1x8x8xf32>
    %58 = arith.addf %55, %57 : vector<4x1x8x8xf32>
    %cst_22 = arith.constant dense<0xFF800000> : vector<4x1x8xf32>
    %59 = vector.multi_reduction <maximumf>, %58, %cst_22 [3] : vector<4x1x8x8xf32> to vector<4x1x8xf32>
    %60 = vector.shape_cast %59 : vector<4x1x8xf32> to vector<4x1x8x1xf32>
    %61 = vector.broadcast %60 : vector<4x1x8x1xf32> to vector<4x1x8x8xf32>
    %62 = arith.subf %58, %61 : vector<4x1x8x8xf32>
    %63 = math.exp %62 : vector<4x1x8x8xf32>
    %cst_23 = arith.constant dense<0.000000e+00> : vector<4x1x8xf32>
    %64 = vector.multi_reduction <add>, %63, %cst_23 [3] : vector<4x1x8x8xf32> to vector<4x1x8xf32>
    %65 = vector.shape_cast %64 : vector<4x1x8xf32> to vector<4x1x8x1xf32>
    %66 = vector.shape_cast %63 : vector<4x1x8x8xf32> to vector<4x8x8xf32>
    %67 = arith.truncf %66 : vector<4x8x8xf32> to vector<4x8x8xbf16>
    "tpu.trace_start"() <{level = 10 : i32, message = "bqk,bkd->bqd"}> : () -> ()
    %cst_24 = arith.constant dense<0.000000e+00> : vector<4x8x16xf32>
    %68 = tpu.matmul %67, %53, %cst_24 {dimension_numbers = #tpu.dot_dimension_numbers<[2], [1], [1], [2], [0, 0, 0, 1, 1, 2], [0], [0]>} : vector<4x8x8xbf16>, vector<4x8x16xbf16>, vector<4x8x16xf32> -> vector<4x8x16xf32>
    "tpu.trace_stop"() : () -> ()
    %69 = vector.shape_cast %65 : vector<4x1x8x1xf32> to vector<4x8x1xf32>
    %70 = tpu.reciprocal %69 {approx = true} : vector<4x8x1xf32> -> vector<4x8x1xf32>
    %71 = vector.broadcast %70 : vector<4x8x1xf32> to vector<4x8x16xf32>
    %72 = arith.mulf %68, %71 : vector<4x8x16xf32>
    %73 = vector.extract_strided_slice %72 {offsets = [0, 0, 0], sizes = [1, 8, 16], strides = [1, 1, 1]} : vector<4x8x16xf32> to vector<1x8x16xf32>
    %74 = vector.shape_cast %73 : vector<1x8x16xf32> to vector<8x16xf32>
    %75 = vector.extract_strided_slice %72 {offsets = [1, 0, 0], sizes = [1, 8, 16], strides = [1, 1, 1]} : vector<4x8x16xf32> to vector<1x8x16xf32>
    %76 = vector.shape_cast %75 : vector<1x8x16xf32> to vector<8x16xf32>
    %77 = vector.extract_strided_slice %72 {offsets = [2, 0, 0], sizes = [1, 8, 16], strides = [1, 1, 1]} : vector<4x8x16xf32> to vector<1x8x16xf32>
    %78 = vector.shape_cast %77 : vector<1x8x16xf32> to vector<8x16xf32>
    %79 = vector.extract_strided_slice %72 {offsets = [3, 0, 0], sizes = [1, 8, 16], strides = [1, 1, 1]} : vector<4x8x16xf32> to vector<1x8x16xf32>
    %80 = vector.shape_cast %79 : vector<1x8x16xf32> to vector<8x16xf32>
    %81 = tpu.concatenate %74, %76, %78, %80 in 1 : vector<8x16xf32>, vector<8x16xf32>, vector<8x16xf32>, vector<8x16xf32> -> vector<8x64xf32>
    %82 = arith.truncf %81 : vector<8x64xf32> to vector<8x64xbf16>
    %c0_25 = arith.constant 0 : index
    %c0_26 = arith.constant 0 : index
    %83 = vector.load %arg9[%c0_25, %c0_26] : memref<64x32xbf16, #tpu.memory_space<vmem>>, vector<64x32xbf16>
    %cst_27 = arith.constant dense<0.000000e+00> : vector<8x32xf32>
    %84 = tpu.matmul %82, %83, %cst_27 {dimension_numbers = #tpu.dot_dimension_numbers<[1], [0], [0], [1], [0, 0, 1, 1], [], []>} : vector<8x64xbf16>, vector<64x32xbf16>, vector<8x32xf32> -> vector<8x32xf32>
    %c0_28 = arith.constant 0 : index
    %c0_29 = arith.constant 0 : index
    %85 = vector.load %arg10[%c0_28, %c0_29] : memref<1x32xf32, #tpu.memory_space<vmem>>, vector<1x32xf32>
    %86 = vector.broadcast %85 : vector<1x32xf32> to vector<8x32xf32>
    %87 = arith.addf %84, %86 : vector<8x32xf32>
    %88 = arith.addf %87, %1 : vector<8x32xf32>
    %c0_30 = arith.constant 0 : index
    %c0_31 = arith.constant 0 : index
    %89 = vector.load %arg11[%c0_30, %c0_31] : memref<1x32xf32, #tpu.memory_space<vmem>>, vector<1x32xf32>
    %c0_32 = arith.constant 0 : index
    %c0_33 = arith.constant 0 : index
    %90 = vector.load %arg12[%c0_32, %c0_33] : memref<1x32xf32, #tpu.memory_space<vmem>>, vector<1x32xf32>
    %cst_34 = arith.constant dense<0.000000e+00> : vector<8xf32>
    %91 = vector.multi_reduction <add>, %88, %cst_34 [1] : vector<8x32xf32> to vector<8xf32>
    %92 = vector.shape_cast %91 : vector<8xf32> to vector<8x1xf32>
    %cst_35 = arith.constant 3.200000e+01 : f32
    %93 = vector.broadcast %cst_35 : f32 to vector<8x1xf32>
    %94 = arith.divf %92, %93 : vector<8x1xf32>
    %95 = vector.broadcast %94 : vector<8x1xf32> to vector<8x32xf32>
    %96 = arith.subf %88, %95 : vector<8x32xf32>
    %97 = vector.broadcast %94 : vector<8x1xf32> to vector<8x32xf32>
    %98 = arith.subf %88, %97 : vector<8x32xf32>
    %99 = arith.mulf %96, %98 : vector<8x32xf32>
    %cst_36 = arith.constant dense<0.000000e+00> : vector<8xf32>
    %100 = vector.multi_reduction <add>, %99, %cst_36 [1] : vector<8x32xf32> to vector<8xf32>
    %101 = vector.shape_cast %100 : vector<8xf32> to vector<8x1xf32>
    %cst_37 = arith.constant 3.200000e+01 : f32
    %102 = vector.broadcast %cst_37 : f32 to vector<8x1xf32>
    %103 = arith.divf %101, %102 : vector<8x1xf32>
    %104 = vector.broadcast %94 : vector<8x1xf32> to vector<8x32xf32>
    %105 = arith.subf %88, %104 : vector<8x32xf32>
    %cst_38 = arith.constant 9.99999974E-6 : f32
    %106 = vector.broadcast %cst_38 : f32 to vector<8x1xf32>
    %107 = arith.addf %103, %106 : vector<8x1xf32>
    %108 = math.rsqrt %107 : vector<8x1xf32>
    %109 = vector.broadcast %108 : vector<8x1xf32> to vector<8x32xf32>
    %110 = arith.mulf %105, %109 : vector<8x32xf32>
    %111 = vector.broadcast %89 : vector<1x32xf32> to vector<8x32xf32>
    %112 = arith.mulf %110, %111 : vector<8x32xf32>
    %113 = vector.broadcast %90 : vector<1x32xf32> to vector<8x32xf32>
    %114 = arith.addf %112, %113 : vector<8x32xf32>
    %115 = arith.truncf %114 : vector<8x32xf32> to vector<8x32xbf16>
    %c0_39 = arith.constant 0 : index
    %c0_40 = arith.constant 0 : index
    %116 = vector.load %arg13[%c0_39, %c0_40] : memref<32x64xbf16, #tpu.memory_space<vmem>>, vector<32x64xbf16>
    %cst_41 = arith.constant dense<0.000000e+00> : vector<8x64xf32>
    %117 = tpu.matmul %115, %116, %cst_41 {dimension_numbers = #tpu.dot_dimension_numbers<[1], [0], [0], [1], [0, 0, 1, 1], [], []>} : vector<8x32xbf16>, vector<32x64xbf16>, vector<8x64xf32> -> vector<8x64xf32>
    %c0_42 = arith.constant 0 : index
    %c0_43 = arith.constant 0 : index
    %118 = vector.load %arg14[%c0_42, %c0_43] : memref<1x64xf32, #tpu.memory_space<vmem>>, vector<1x64xf32>
    %119 = vector.broadcast %118 : vector<1x64xf32> to vector<8x64xf32>
    %120 = arith.addf %117, %119 : vector<8x64xf32>
    %cst_44 = arith.constant 5.000000e-01 : f32
    %121 = vector.broadcast %cst_44 : f32 to vector<8x64xf32>
    %122 = arith.mulf %121, %120 : vector<8x64xf32>
    %cst_45 = arith.constant 4.471500e-02 : f32
    %123 = vector.broadcast %cst_45 : f32 to vector<8x64xf32>
    %124 = arith.mulf %123, %120 : vector<8x64xf32>
    %125 = arith.mulf %124, %120 : vector<8x64xf32>
    %126 = arith.mulf %125, %120 : vector<8x64xf32>
    %127 = arith.addf %120, %126 : vector<8x64xf32>
    %cst_46 = arith.constant 0.797884583 : f32
    %128 = vector.broadcast %cst_46 : f32 to vector<8x64xf32>
    %129 = arith.mulf %128, %127 : vector<8x64xf32>
    %130 = math.tanh %129 : vector<8x64xf32>
    %cst_47 = arith.constant 1.000000e+00 : f32
    %131 = vector.broadcast %cst_47 : f32 to vector<8x64xf32>
    %132 = arith.addf %131, %130 : vector<8x64xf32>
    %133 = arith.mulf %122, %132 : vector<8x64xf32>
    %134 = arith.truncf %133 : vector<8x64xf32> to vector<8x64xbf16>
    %c0_48 = arith.constant 0 : index
    %c0_49 = arith.constant 0 : index
    %135 = vector.load %arg15[%c0_48, %c0_49] : memref<64x32xbf16, #tpu.memory_space<vmem>>, vector<64x32xbf16>
    %cst_50 = arith.constant dense<0.000000e+00> : vector<8x32xf32>
    %136 = tpu.matmul %134, %135, %cst_50 {dimension_numbers = #tpu.dot_dimension_numbers<[1], [0], [0], [1], [0, 0, 1, 1], [], []>} : vector<8x64xbf16>, vector<64x32xbf16>, vector<8x32xf32> -> vector<8x32xf32>
    %c0_51 = arith.constant 0 : index
    %c0_52 = arith.constant 0 : index
    %137 = vector.load %arg16[%c0_51, %c0_52] : memref<1x32xf32, #tpu.memory_space<vmem>>, vector<1x32xf32>
    %138 = vector.broadcast %137 : vector<1x32xf32> to vector<8x32xf32>
    %139 = arith.addf %136, %138 : vector<8x32xf32>
    %140 = arith.addf %139, %114 : vector<8x32xf32>
    %c0_53 = arith.constant 0 : index
    %c0_54 = arith.constant 0 : index
    %141 = vector.load %arg17[%c0_53, %c0_54] : memref<1x32xf32, #tpu.memory_space<vmem>>, vector<1x32xf32>
    %c0_55 = arith.constant 0 : index
    %c0_56 = arith.constant 0 : index
    %142 = vector.load %arg18[%c0_55, %c0_56] : memref<1x32xf32, #tpu.memory_space<vmem>>, vector<1x32xf32>
    %cst_57 = arith.constant dense<0.000000e+00> : vector<8xf32>
    %143 = vector.multi_reduction <add>, %140, %cst_57 [1] : vector<8x32xf32> to vector<8xf32>
    %144 = vector.shape_cast %143 : vector<8xf32> to vector<8x1xf32>
    %cst_58 = arith.constant 3.200000e+01 : f32
    %145 = vector.broadcast %cst_58 : f32 to vector<8x1xf32>
    %146 = arith.divf %144, %145 : vector<8x1xf32>
    %147 = vector.broadcast %146 : vector<8x1xf32> to vector<8x32xf32>
    %148 = arith.subf %140, %147 : vector<8x32xf32>
    %149 = vector.broadcast %146 : vector<8x1xf32> to vector<8x32xf32>
    %150 = arith.subf %140, %149 : vector<8x32xf32>
    %151 = arith.mulf %148, %150 : vector<8x32xf32>
    %cst_59 = arith.constant dense<0.000000e+00> : vector<8xf32>
    %152 = vector.multi_reduction <add>, %151, %cst_59 [1] : vector<8x32xf32> to vector<8xf32>
    %153 = vector.shape_cast %152 : vector<8xf32> to vector<8x1xf32>
    %cst_60 = arith.constant 3.200000e+01 : f32
    %154 = vector.broadcast %cst_60 : f32 to vector<8x1xf32>
    %155 = arith.divf %153, %154 : vector<8x1xf32>
    %156 = vector.broadcast %146 : vector<8x1xf32> to vector<8x32xf32>
    %157 = arith.subf %140, %156 : vector<8x32xf32>
    %cst_61 = arith.constant 9.99999974E-6 : f32
    %158 = vector.broadcast %cst_61 : f32 to vector<8x1xf32>
    %159 = arith.addf %155, %158 : vector<8x1xf32>
    %160 = math.rsqrt %159 : vector<8x1xf32>
    %161 = vector.broadcast %160 : vector<8x1xf32> to vector<8x32xf32>
    %162 = arith.mulf %157, %161 : vector<8x32xf32>
    %163 = vector.broadcast %141 : vector<1x32xf32> to vector<8x32xf32>
    %164 = arith.mulf %162, %163 : vector<8x32xf32>
    %165 = vector.broadcast %142 : vector<1x32xf32> to vector<8x32xf32>
    %166 = arith.addf %164, %165 : vector<8x32xf32>
    %167 = vector.shape_cast %166 : vector<8x32xf32> to vector<1x8x32xf32>
    %c0_62 = arith.constant 0 : index
    %c0_63 = arith.constant 0 : index
    %c0_64 = arith.constant 0 : index
    %168 = vector.load %arg19[%c0_62, %c0_63, %c0_64] : memref<1x8x32xf32, #tpu.memory_space<vmem>>, vector<1x8x32xf32>
    tpu.vector_store %arg19[%c0_62, %c0_63, %c0_64], %167 {strides = array<i32>} : memref<1x8x32xf32, #tpu.memory_space<vmem>>, vector<1x8x32xf32>,
    return
  }
  func.func @transform_0(%arg0: i32) -> (i32, i32, i32) {
    %c0_i32 = arith.constant 0 : i32
    %c0_i32_0 = arith.constant 0 : i32
    %c0_i32_1 = arith.constant 0 : i32
    return %arg0, %c0_i32, %c0_i32_0 : i32, i32, i32
  }
  func.func @transform_1(%arg0: i32) -> (i32, i32, i32) {
    %c0_i32 = arith.constant 0 : i32
    %c0_i32_0 = arith.constant 0 : i32
    %c0_i32_1 = arith.constant 0 : i32
    return %arg0, %c0_i32, %c0_i32_0 : i32, i32, i32
  }
  func.func @transform_2(%arg0: i32) -> (i32, i32) {
    %c0_i32 = arith.constant 0 : i32
    %c0_i32_0 = arith.constant 0 : i32
    %c0_i32_1 = arith.constant 0 : i32
    return %c0_i32, %c0_i32_0 : i32, i32
  }
  func.func @transform_3(%arg0: i32) -> (i32, i32) {
    %c0_i32 = arith.constant 0 : i32
    %c0_i32_0 = arith.constant 0 : i32
    %c0_i32_1 = arith.constant 0 : i32
    return %c0_i32, %c0_i32_0 : i32, i32
  }
  func.func @transform_4(%arg0: i32) -> (i32, i32) {
    %c0_i32 = arith.constant 0 : i32
    %c0_i32_0 = arith.constant 0 : i32
    %c0_i32_1 = arith.constant 0 : i32
    return %c0_i32, %c0_i32_0 : i32, i32
  }
  func.func @transform_5(%arg0: i32) -> (i32, i32) {
    %c0_i32 = arith.constant 0 : i32
    %c0_i32_0 = arith.constant 0 : i32
    %c0_i32_1 = arith.constant 0 : i32
    return %c0_i32, %c0_i32_0 : i32, i32
  }
  func.func @transform_6(%arg0: i32) -> (i32, i32) {
    %c0_i32 = arith.constant 0 : i32
    %c0_i32_0 = arith.constant 0 : i32
    %c0_i32_1 = arith.constant 0 : i32
    return %c0_i32, %c0_i32_0 : i32, i32
  }
  func.func @transform_7(%arg0: i32) -> (i32, i32) {
    %c0_i32 = arith.constant 0 : i32
    %c0_i32_0 = arith.constant 0 : i32
    %c0_i32_1 = arith.constant 0 : i32
    return %c0_i32, %c0_i32_0 : i32, i32
  }
  func.func @transform_8(%arg0: i32) -> (i32, i32) {
    %c0_i32 = arith.constant 0 : i32
    %c0_i32_0 = arith.constant 0 : i32
    %c0_i32_1 = arith.constant 0 : i32
    return %c0_i32, %c0_i32_0 : i32, i32
  }
  func.func @transform_9(%arg0: i32) -> (i32, i32) {
    %c0_i32 = arith.constant 0 : i32
    %c0_i32_0 = arith.constant 0 : i32
    %c0_i32_1 = arith.constant 0 : i32
    return %c0_i32, %c0_i32_0 : i32, i32
  }
  func.func @transform_10(%arg0: i32) -> (i32, i32) {
    %c0_i32 = arith.constant 0 : i32
    %c0_i32_0 = arith.constant 0 : i32
    %c0_i32_1 = arith.constant 0 : i32
    return %c0_i32, %c0_i32_0 : i32, i32
  }
  func.func @transform_11(%arg0: i32) -> (i32, i32) {
    %c0_i32 = arith.constant 0 : i32
    %c0_i32_0 = arith.constant 0 : i32
    %c0_i32_1 = arith.constant 0 : i32
    return %c0_i32, %c0_i32_0 : i32, i32
  }
  func.func @transform_12(%arg0: i32) -> (i32, i32) {
    %c0_i32 = arith.constant 0 : i32
    %c0_i32_0 = arith.constant 0 : i32
    %c0_i32_1 = arith.constant 0 : i32
    return %c0_i32, %c0_i32_0 : i32, i32
  }
  func.func @transform_13(%arg0: i32) -> (i32, i32) {
    %c0_i32 = arith.constant 0 : i32
    %c0_i32_0 = arith.constant 0 : i32
    %c0_i32_1 = arith.constant 0 : i32
    return %c0_i32, %c0_i32_0 : i32, i32
  }
  func.func @transform_14(%arg0: i32) -> (i32, i32) {
    %c0_i32 = arith.constant 0 : i32
    %c0_i32_0 = arith.constant 0 : i32
    %c0_i32_1 = arith.constant 0 : i32
    return %c0_i32, %c0_i32_0 : i32, i32
  }
  func.func @transform_15(%arg0: i32) -> (i32, i32) {
    %c0_i32 = arith.constant 0 : i32
    %c0_i32_0 = arith.constant 0 : i32
    %c0_i32_1 = arith.constant 0 : i32
    return %c0_i32, %c0_i32_0 : i32, i32
  }
  func.func @transform_16(%arg0: i32) -> (i32, i32) {
    %c0_i32 = arith.constant 0 : i32
    %c0_i32_0 = arith.constant 0 : i32
    %c0_i32_1 = arith.constant 0 : i32
    return %c0_i32, %c0_i32_0 : i32, i32
  }
  func.func @transform_17(%arg0: i32) -> (i32, i32) {
    %c0_i32 = arith.constant 0 : i32
    %c0_i32_0 = arith.constant 0 : i32
    %c0_i32_1 = arith.constant 0 : i32
    return %c0_i32, %c0_i32_0 : i32, i32
  }
  func.func @transform_18(%arg0: i32) -> (i32, i32, i32) {
    %c0_i32 = arith.constant 0 : i32
    %c0_i32_0 = arith.constant 0 : i32
    %c0_i32_1 = arith.constant 0 : i32
    return %arg0, %c0_i32, %c0_i32_0 : i32, i32, i32
  }
}

</mosaic_0001>

<bundles_post_ra>
// kernel: tpu_custom_call.1
= control target key start
LH: loop header
LB: loop body
LE: loop exit
PB: predicated region body
PF: predicated region fallthrough
CT: control target
= control target key end

     0   :  { %s1958_s0 = inlined_call_operand.vmem [shape: f32[2,8,32], index: 0, kind: input, shape index: {}]   ;;  %s1959_s1 = inlined_call_operand.hbm [shape: s8[2,8,8], index: 1, kind: input, shape index: {}]   ;;  %s1960_s2 = inlined_call_operand.vmem [shape: bf16[32,64], index: 2, kind: input, shape index: {}]   ;;  %s1961_s3 = inlined_call_operand.vmem [shape: f32[1,64], index: 3, kind: input, shape index: {}]   ;;  %s1962_s4 = inlined_call_operand.vmem [shape: bf16[32,64], index: 4, kind: input, shape index: {}]   ;;  %s1963_s5 = inlined_call_operand.vmem [shape: f32[1,64], index: 5, kind: input, shape index: {}]   ;;  %s1964_s6 = inlined_call_operand.vmem [shape: bf16[32,64], index: 6, kind: input, shape index: {}]   ;;  %s1965_s7 = inlined_call_operand.vmem [shape: f32[1,64], index: 7, kind: input, shape index: {}]   ;;  %s1966_s8 = inlined_call_operand.vmem [shape: bf16[64,32], index: 8, kind: input, shape index: {}]   ;;  %s1967_s9 = inlined_call_operand.vmem [shape: f32[1,32], index: 9, kind: input, shape index: {}]   ;;  %s1968_s10 = inlined_call_operand.vmem [shape: f32[1,32], index: 10, kind: input, shape index: {}]   ;;  %s1969_s11 = inlined_call_operand.vmem [shape: f32[1,32], index: 11, kind: input, shape index: {}]   ;;  %s1970_s12 = inlined_call_operand.vmem [shape: bf16[32,64], index: 12, kind: input, shape index: {}]   ;;  %s1971_s13 = inlined_call_operand.vmem [shape: f32[1,64], index: 13, kind: input, shape index: {}]   ;;  %s1972_s14 = inlined_call_operand.vmem [shape: bf16[64,32], index: 14, kind: input, shape index: {}]   ;;  %s1973_s15 = inlined_call_operand.vmem [shape: f32[1,32], index: 15, kind: input, shape index: {}]   ;;  %s1974_s16 = inlined_call_operand.vmem [shape: f32[1,32], index: 16, kind: input, shape index: {}]   ;;  %s1975_s17 = inlined_call_operand.vmem [shape: f32[1,32], index: 17, kind: input, shape index: {}]   ;;  %s1976_s18 = inlined_call_operand.hbm [shape: f32[2,8,32], index: 18, kind: output, shape index: {}]  }
   0x1   :  { %1988 = sst [smem:[#allocation14_spill]] %s1958_s0 }
   0x2   :  { %1989 = sst [smem:[#allocation15_spill]] %s1959_s1 }
   0x3   :  { %1990 = sst [smem:[#allocation16_spill]] %s1960_s2 }
   0x4   :  { %1991 = sst [smem:[#allocation17_spill]] %s1971_s13 }
   0x5   :  { %1992 = sst [smem:[#allocation18_spill]] %s1973_s15 }
   0x6   :  { %1993 = sst [smem:[#allocation19_spill]] %s1974_s16 }
   0x7   :  { %1994 = sst [smem:[#allocation20_spill]] %s1975_s17 }
   0x8   :  { %1995 = sst [smem:[#allocation21_spill]] %s1976_s18 }
   0x9   :  { %23 = vsyncpa [#allocation3], 0 }
   0xa   :  { %25 = vsyncpa [#allocation3 + $0x1], 0 }
   0xb   :  { %26 = vsyncpa [#allocation4], 0 }
   0xc   :  { %28 = vsyncpa [#allocation4 + $0x1], 0  ;;  %s1687_s27 = smov 0   ;;  %s1689_s28 = smov 0  }
   0xd   :  { %s1691_s29 = smov 0   ;;  %s1693_s30 = smov 0  }
   0xe LB: > { %1996 = sst [smem:[#allocation8_spill]] %s1571_s27  ;;  %s1708_s0 = sadd.s32 4294967295, %s1583_s30   ;;  %s1583_s30 = sphi %s1693_s30, %s2020_s30   ;;  %s1579_s29 = sphi %s1691_s29, %s2022_s29   ;;  %s1575_s28 = sphi %s1689_s28, %s2024_s28   ;;  %s1571_s27 = sphi %s1687_s27, %s2023_s27  }
   0xf   : > { %1997 = sst [smem:[#allocation9_spill]] %s1579_s29  ;;  %s1293_s19 = sadd.s32 4294967294, %s1583_s30  }
  0x10   : > { %s1712_s1 = sadd.s32 1, %s1583_s30   ;;  %s67_s20 = sadd.s32 1, %s1579_s29 }
  0x11   : > { %1998 = sst [smem:[#allocation10_spill]] %s1712_s1  ;;  %s64_s21 = ssub.s32 %s1583_s30, %s1712_s1 }
  0x12   : > { %p74_p0 = scmp.ne.s32.totalorder %s1579_s29, %s1575_s28  ;;  %p65_p1 = scmp.eq.s32.totalorder %s64_s21, 0 }
  0x13   : > { %p75_p2 = scmp.eq.s32.totalorder %s1583_s30, 0  ;;  %p80_p3 = scmp.ne.s32.totalorder %s1575_s28, %s1571_s27 }
  0x14   : > { %p81_p4 = scmp.eq.s32.totalorder %s1708_s0, 0  ;;  %p440_p7 = scmp.eq.s32.totalorder %s1708_s0, 1 }
  0x15   : > { %s1724_s22 = scalar_select %p65_p1, %s1579_s29, %s67_s20  }
  0x16   : > { %p1726_p5 = por %p75_p2, %p74_p0  ;;  %p1730_p6 = por %p81_p4, %p80_p3 }
  0x17   : > { %1999 = sst [smem:[#allocation11_spill]] %s1724_s22  ;;  %p446_p8 = scmp.eq.s32.totalorder %s1293_s19, 1 }
  0x18   : > { %p1412_p10 = scmp.lt.s32.totalorder %s1583_s30, 2  ;;  %p1737_p11 = por %p440_p7, %p74_p0 }
  0x19   : > { %p1741_p12 = por %p446_p8, %p80_p3  ;;  %s521_s26 = sand.u32 1, %s1579_s29  }
  0x1a   : > { %s2002_s24 = scalar_select %p1737_p11, 1, 0 }
  0x1b   : > { %s2004_s25 = scalar_select %p1741_p12, 1, 0 }
  0x1c   : > { %2003 = sst [smem:[#allocation12_spill]] %s2002_s24  ;;  %s1297_s20 = sshll.u32 %s1583_s30, 1 }
  0x1d   : > { %2005 = sst [smem:[#allocation13_spill]] %s2004_s25  ;;  %s1296_s21 = sshll.u32 %s521_s26, 1 }
  0x1e   : > { %s2006_s27 = sld [smem:[#allocation15_spill]]  ;;  %s525_s19 = scalar_lea.vmem [#allocation2], %s1296_s21 }
  0x1f   : > { %s533_s15 = sshll.u32 %s525_s19, 4  ;;  %p1752_p13 = pnand %p1412_p10, %p1726_p5  ;;  %s534_s15 = int_to_ptr.vmem [resolvable:$true] %s533_s15 }
  0x20   : > { %p1298_p0 = scmp.ge.s32.totalorder %s1583_s30, 1  ;;  %p538_p1 = scmp.lt.s32.totalorder %s1583_s30, 3 }
  0x21   : > { %s522_s29 = scalar_lea.sflag [#allocation3], %s521_s26  ;;  %p1491_p3 = pneg %p1752_p13 }
  0x24   : > { %s2007_s17 = smov %s2006_s27  ;;  %s529_s18 = scalar_lea.hbm %s2006_s27, %s1297_s20 }
  0x25   : > { %s531_s16 = sshll.u32 %s529_s18, 4  ;;  %s1494_s1 = scalar_lea.hbm %s2007_s17, 4  ;;  %s532_s16 = int_to_ptr.hbm [resolvable:$true] %s531_s16 }
  0x26   : > { %s1487_s25 = sshra.s32 %s532_s16, 4  ;;  %s1488_s25 = int_to_ptr.hbm [resolvable:$true] %s1487_s25 }
  0x27   : > { %s1489_s24 = scalar_lea.hbm %s1488_s25, 2  ;;  %p1495_p5 = scmp.lt.s32.totalorder %s1488_s25, %s2007_s17 }
  0x28   : > { %p1490_p2 = scmp.ne.s32.totalorder %s1488_s25, %s1489_s24  ;;  %p1496_p8 = scmp.lt.s32.totalorder %s1494_s1, %s1489_s24 }
  0x2a   : > { %p1492_p4 = pnand %p1491_p3, %p1490_p2  ;;  %p1497_p10 = por %p1496_p8, %p1495_p5 }
  0x2c   : > { %p1493_p7 = pneg %p1492_p4 }
  0x2e   : > { %p1498_p9 = pnand %p1497_p10, %p1493_p7 }
  0x30   : > { %1501 = shalt.err (!%p1498_p9)
}
  0x31   : > { %1407 = dma.hbm_to_vmem [thread:$0]  (!%p1752_p13), %s532_s16, 32, %s534_s15, %s522_s29  }
  0x32   : > { %p539_p2 = pnand %p1298_p0, %p538_p1 }
  0x33   : > { %s1773_s26 = sand.u32 (!%p539_p2), 1, %s1575_s28  }
  0x34   : > { %542 = sbr.rel (%p539_p2) target bundleno = 1802 (0x70a), region = 92  ;;  %s1299_s25 = sshll.u32 (!%p539_p2), %s1773_s26, 1 }
  0x35   : > { %s545_s24 = scalar_lea.sflag (!%p539_p2), [#allocation3], %s1773_s26  ;;  %s1777_s20 = scalar_lea.vmem (!%p539_p2), [#allocation2], %s1299_s25 }
  0x39   : > { %1562 = dma.done.wait (%p1730_p6), %s545_s24, 32  }
  0x3a   : > { %1564 = vsyncadd (%p1730_p6), %s545_s24, 4294967264  ;;  %p606_p9 = scmp.lt.s32.totalorder %s1708_s0, 1  ;;  %s2009_s21 = sld [smem:[#allocation14_spill]]  ;;  %v1387_v1 = vld [vmem:[%s1962_s4 + $0x8] sm:$0xff]  ;;  %v1386_v3 = vld [vmem:[%s1962_s4] sm:$0xff]  ;;  %vm637_vm0 = vcmask 261120  }
  0x3b   : > { %s2010_s1 = sld [smem:[#allocation16_spill]]  ;;  %681 = vmatpush.bf16.msra.mxu1 %v1387_v1  ;;  %v1389_v6 = vld [vmem:[%s1964_s6 + $0x8] sm:$0xff]  ;;  %v1453_v7 = vld [vmem:[%s1961_s3] ss:$0 sm:$0xff]  ;;  %vm745_vm1 = vcmask 130048   ;;  %s1586_s18 = smov 80  }
  0x3c   : > { %s607_s13 = scalar_select %p606_p9, %s1708_s0, 1  ;;  %714 = vmatpush.bf16.msra.mxu2 %v1389_v6  ;;  %v1454_v8 = vld [vmem:[%s1963_s5] ss:$0 sm:$0xff]  ;;  %vm870_vm2 = vcmask 1043456   ;;  %vm826_vm3 = vcmask 64512   ;;  %vm966_vm4 = vcmask 392192  }
  0x3d   : > { %s1587_s27 = smov 96   ;;  %v1388_v19 = vld [vmem:[%s1964_s6] sm:$0xff]  ;;  %s1589_s24 = smov 32   ;;  %vm1005_vm5 = vcmask 523264  }
  0x3e   : > { %s1301_s15 = sshll.u32 %s607_s13, 3  ;;  %v1455_v31 = vld [vmem:[%s1965_s7] ss:$0 sm:$0xff]  ;;  %s1590_s13 = smov 16  }
  0x3f   : > { %682 = vmatpush.bf16.msra.mxu1 %v1386_v3  ;;  %v613_v37 = vld [vmem:[%s1777_s20] sm:$0x3]  ;;  %s1588_s20 = smov 48   ;;  %s2012_s17 = sld [smem:[#allocation18_spill]] }
  0x40   : > { %s609_s19 = scalar_lea.vmem %s2009_s21, %s1301_s15  ;;  %715 = vmatpush.bf16.msra.mxu2 %v1388_v19  ;;  %v614_v38 = vunpack.c.0.s8 %v613_v37  ;;  %s1300_s16 = sshll.u32 %s1773_s26, 3 }
  0x41   : > { %v1385_v0 = vld [vmem:[%s2010_s1 + $0x8] sm:$0xff]  ;;  %v1384_v2 = vld [vmem:[%s2010_s1] sm:$0xff]  ;;  %s1381_s29 = sshll.u32 %s1708_s0, 3  ;;  %s2014_s2 = sld [smem:[#allocation21_spill]] }
  0x42   : > { %647 = vmatpush.bf16.msra.mxu0 %v1385_v0  ;;  %v1800_v4 = vld [vmem:[%s609_s19] sm:$0xff]  ;;  %s1585_s19 = smov 112   ;;  %v615_v39 = vcvt.s32.f32 %v614_v38  ;;  %v1393_v38 = vld [vmem:[%s1966_s8 + $0x18] sm:$0xff]  ;;  %s605_s0 = scalar_lea.vmem [#allocation5], %s1300_s16 }
  0x43   : > { %v612_v5 = vpack.c.bf16 %v1800_v4, %v1800_v4  ;;  %s1208_s15 = sshll.u32 %s605_s0, 4  ;;  %s1196_s21 = scalar_lea.sflag [#allocation4], %s1773_s26  ;;  %s1209_s15 = int_to_ptr.vmem [resolvable:$true] %s1208_s15 }
  0x44   : > { %v616_v40 = vmul.f32 -1e+09, %v615_v39  ;;  %v1392_v39 = vld [vmem:[%s1966_s8 + $0x10] sm:$0xff] }
  0x45   : > { %1319 = vmatmul.msk.bf16.vlgmr.msra.gmra.mxu1 %vm637_vm0, %v612_v5  ;;  %1328 = vmatmul.msk.bf16.vlgmr.msra.gmra.mxu2 %vm637_vm0, %v612_v5 }
  0x46   : > { %648 = vmatpush.bf16.msra.mxu0 %v1384_v2 }
  0x47   : > { %s1206_s25 = scalar_lea.hbm %s2014_s2, %s1381_s29  ;;  %s1537_s16 = scalar_lea.hbm %s2014_s2, 16 }
  0x49   : > { %1310 = vmatmul.msk.bf16.vlgmr.msra.gmra.mxu0 %vm637_vm0, %v612_v5 }
  0xc2   : > { %v684_v10 = vpop.f32.mrf.mxu1 }
  0xc3   : > { %v685_v12 = vadd.f32 %v1454_v8, %v684_v10 }
  0xc5   : > { %v722_v14 = vpack.c.bf16 %v685_v12, %v685_v12 }
  0xc6   : > { %v650_v9 = vpop.f32.mrf.mxu0 }
  0xc7   : > { %v651_v11 = vadd.f32 %v1453_v7, %v650_v9  ;;  %732 = vrot.lane.b32.xlu1 %v722_v14, %s1585_s19  ;;  %736 = vrot.lane.b32.xlu0 %v722_v14, %s1586_s18  ;;  %v750_v16 = vsel %vm745_vm1, %v722_v14, 0 }
  0xc8   : > { %759 = vmatpush.bf16.xpose.msra.mxu3 %v750_v16  ;;  %v717_v32 = vpop.f32.mrf.mxu2 }
  0xc9   : > { %v654_v13 = vmul.f32 0.25, %v651_v11  ;;  %v718_v33 = vadd.f32 %v1455_v31, %v717_v32 }
  0xca   : > { %v686_v18 = vpop.f32.mrf.mxu1 }
  0xcb   : > { %v721_v15 = vpack.c.bf16 %v654_v13, %v654_v13  ;;  %v723_v34 = vpack.c.bf16 %v718_v33, %v718_v33 }
  0xcd   : > { %725 = vrot.lane.b32.xlu2 %v721_v15, %s1585_s19  ;;  %v872_v35 = vsel %vm870_vm2, %v723_v34, 0 }
  0xce   : > { %v652_v17 = vpop.f32.mrf.mxu0 }
  0xcf   : > { %734 = vrot.lane.b32.xlu1 %v722_v14, %s1587_s27  ;;  %729 = vrot.lane.b32.xlu0 %v721_v15, %s1586_s18 }
  0xd0   : > { %1329 = vmatmul.msk.bf16.vlgmr.msra.gmra.mxu3 %vm745_vm1, %v721_v15  ;;  %v719_v36 = vpop.f32.mrf.mxu2 }
  0xd1   : > { %881 = vmatpush.bf16.msrb.mxu3 %v872_v35 }
  0xd5   : > { %727 = vrot.lane.b32.xlu2 %v721_v15, %s1587_s27  ;;  %1013 = vmatpush.bf16.msra.mxu3 %v1393_v38 }
  0xd9   : > { %1014 = vmatpush.bf16.msra.mxu3 %v1392_v39 }
 0x127   : > { %v726_v24 = vpop.permute.xlu2 %725 }
 0x12f   : > { %v728_v28 = vpop.permute.xlu2 %727 }
 0x139   : > { %v733_v20 = vpop.permute.xlu1 %732  ;;  %v737_v21 = vpop.permute.xlu0 %736 }
 0x13a   : > { %v769_v22 = vsel %vm745_vm1, %v733_v20, 0  ;;  %v807_v23 = vsel %vm745_vm1, %v737_v21, 0 }
 0x13b   : > { %778 = vmatpush.bf16.xpose.msrb.mxu0 %v769_v22  ;;  %816 = vmatpush.bf16.xpose.msrb.mxu2 %v807_v23 }
 0x141   : > { %v735_v25 = vpop.permute.xlu1 %734  ;;  %v730_v26 = vpop.permute.xlu0 %729 }
 0x142   : > { %1330 = vmatmul.msk.bf16.vlgmr.msrb.gmra.mxu0 %vm745_vm1, %v726_v24  ;;  %1332 = vmatmul.msk.bf16.vlgmr.msrb.gmra.mxu2 %vm745_vm1, %v730_v26  ;;  %v788_v27 = vsel %vm745_vm1, %v735_v25, 0 }
 0x143   : > { %797 = vmatpush.bf16.xpose.msrb.mxu1 %v788_v27 }
 0x14a   : > { %1331 = vmatmul.msk.bf16.vlgmr.msrb.gmra.mxu1 %vm745_vm1, %v728_v28 }
 0x153   : > { %v761_v29 = vpop.f32.mrf.mxu3 }
 0x154   : > { %v822_v53 = vadd.f32 %v761_v29, %v616_v40 }
 0x156   : > { %v827_v54 = vsel %vm826_vm3, %v822_v53, -inf }
 0x15b   : > { %v763_v30 = vpop.f32.mrf.mxu3 }
 0x1bf   : > { %v780_v41 = vpop.f32.mrf.mxu0 }
 0x1c0   : > { %v823_v42 = vadd.f32 %v780_v41, %v616_v40 }
 0x1c2   : > { %v830_v43 = vsel %vm826_vm3, %v823_v42, -inf }
 0x1c3   : > { %831 = vmax.xlane.f32.xlu1 %v830_v43 }
 0x1c5   : > { %v818_v44 = vpop.f32.mrf.mxu2 }
 0x1c6   : > { %v825_v45 = vadd.f32 %v818_v44, %v616_v40 }
 0x1c7   : > { %v782_v46 = vpop.f32.mrf.mxu0  ;;  %v799_v47 = vpop.f32.mrf.mxu1 }
 0x1c8   : > { %v824_v48 = vadd.f32 %v799_v47, %v616_v40  ;;  %v836_v49 = vsel %vm826_vm3, %v825_v45, -inf  ;;  %v1391_v40 = vld [vmem:[%s1966_s8 + $0x8] sm:$0xff] }
 0x1c9   : > { %837 = vmax.xlane.f32.xlu0 %v836_v49  ;;  %1015 = vmatpush.bf16.msra.mxu3 %v1391_v40 }
 0x1ca   : > { %v833_v50 = vsel %vm826_vm3, %v824_v48, -inf }
 0x1cb   : > { %834 = vmax.xlane.f32.xlu2 %v833_v50 }
 0x1cd   : > { %v820_v51 = vpop.f32.mrf.mxu2 }
 0x1cf   : > { %v801_v52 = vpop.f32.mrf.mxu1 }
 0x1dc   : > { %741 = vrot.lane.b32.xlu1 %v723_v34, %s1587_s27 }
 0x1dd   : > { %739 = vrot.lane.b32.xlu0 %v723_v34, %s1585_s19 }
 0x1e3   : > { %743 = vrot.lane.b32.xlu2 %v723_v34, %s1586_s18  ;;  %s2013_s18 = sld [smem:[#allocation19_spill]] }
 0x207   : > { %828 = vmax.xlane.f32.xlu0 %v827_v54 }
 0x236   : > { %v832_v55 = vpop.xlane.xlu1 %831 }
 0x237   : > { %v840_v56 = vsub.f32 %v823_v42, %v832_v55  ;;  %v1390_v42 = vld [vmem:[%s1966_s8] sm:$0xff] }
 0x238   : > { %1016 = vmatpush.bf16.msra.mxu3 %v1390_v42 }
 0x239   : > { %v845_v57 = vmul.f32 1.442695, %v840_v56 }
 0x23b   : > { %1463 = vpow2.f32 %v845_v57 }
 0x23c   : > { %v838_v58 = vpop.xlane.xlu0 %837 }
 0x23d   : > { %v842_v59 = vsub.f32 %v825_v45, %v838_v58 }
 0x23e   : > { %v835_v60 = vpop.xlane.xlu2 %834 }
 0x23f   : > { %v849_v61 = vmul.f32 1.442695, %v842_v59  ;;  %v841_v62 = vsub.f32 %v824_v48, %v835_v60  ;;  %v1591_v59 = vmov 32.0  }
 0x241   : > { %v1464_v63 = vpop.eup %1463  ;;  %1465 = vpow2.f32 %v849_v61  ;;  %v847_v0 = vmul.f32 1.442695, %v841_v62 }
 0x242   : > { %v854_v1 = vsel %vm826_vm3, %v1464_v63, 0.0  ;;  %v864_v15 = vpack.c.bf16 %v1464_v63, %v1464_v63 }
 0x243   : > { %1467 = vpow2.f32 %v847_v0  ;;  %855 = vadd.xlane.f32.xlu2 %v854_v1 }
 0x246   : > { %v744_v2 = vpop.permute.xlu2 %743 }
 0x247   : > { %v1466_v3 = vpop.eup %1465  ;;  %v929_v5 = vsel %vm870_vm2, %v744_v2, 0 }
 0x248   : > { %v866_v6 = vpack.c.bf16 %v1466_v3, %v1466_v3  ;;  %938 = vmatpush.bf16.msra.mxu2 %v929_v5  ;;  %v860_v7 = vsel %vm826_vm3, %v1466_v3, 0.0 }
 0x249   : > { %v1468_v8 = vpop.eup %1467  ;;  %861 = vadd.xlane.f32.xlu0 %v860_v7  ;;  %v1395_v7 = vld [vmem:[%s1970_s12 + $0x8] sm:$0xff] }
 0x24a   : > { %v857_v9 = vsel %vm826_vm3, %v1468_v8, 0.0  ;;  %v865_v14 = vpack.c.bf16 %v1468_v8, %v1468_v8  ;;  %v1394_v8 = vld [vmem:[%s1970_s12] sm:$0xff] }
 0x24b   : > { %858 = vadd.xlane.f32.xlu1 %v857_v9  ;;  %1336 = vmatmul.msk.bf16.vlgmr.msra.gmra.mxu2 %vm826_vm3, %v866_v6 }
 0x24e   : > { %v742_v10 = vpop.permute.xlu1 %741 }
 0x24f   : > { %v910_v11 = vsel %vm870_vm2, %v742_v10, 0  ;;  %v740_v12 = vpop.permute.xlu0 %739 }
 0x250   : > { %v891_v13 = vsel %vm870_vm2, %v740_v12, 0  ;;  %919 = vmatpush.bf16.msra.mxu1 %v910_v11 }
 0x251   : > { %900 = vmatpush.bf16.msra.mxu0 %v891_v13 }
 0x253   : > { %1335 = vmatmul.msk.bf16.vlgmr.msra.gmra.mxu1 %vm826_vm3, %v865_v14 }
 0x254   : > { %1334 = vmatmul.msk.bf16.vlgmr.msra.gmra.mxu0 %vm826_vm3, %v864_v15 }
 0x255   : > { %1092 = vmatpush.bf16.msrb.mxu0 %v1395_v7 }
 0x259   : > { %1093 = vmatpush.bf16.msrb.mxu0 %v1394_v8 }
 0x27a   : > { %v829_v16 = vpop.xlane.xlu0 %828 }
 0x27b   : > { %v839_v17 = vsub.f32 %v822_v53, %v829_v16  ;;  %v1456_v53 = vld [vmem:[%s1967_s9] ss:$0 sm:$0xff] }
 0x27d   : > { %v843_v18 = vmul.f32 1.442695, %v839_v17 }
 0x27f   : > { %1469 = vpow2.f32 %v843_v18  ;;  %v1457_v18 = vld [vmem:[%s1968_s10] ss:$0 sm:$0xff] }
 0x285   : > { %v1470_v19 = vpop.eup %1469 }
 0x286   : > { %v851_v20 = vsel %vm826_vm3, %v1470_v19, 0.0  ;;  %v863_v21 = vpack.c.bf16 %v1470_v19, %v1470_v19 }
 0x287   : > { %852 = vadd.xlane.f32.xlu2 %v851_v20  ;;  %v1458_v20 = vld [vmem:[%s1969_s11] ss:$0 sm:$0xff] }
 0x288   : > { %1333 = vmatmul.msk.bf16.vlgmr.msrb.gmra.mxu3 %vm826_vm3, %v863_v21 }
 0x2b6   : > { %v856_v24 = vpop.xlane.xlu2 %855 }
 0x2bc   : > { %v862_v22 = vpop.xlane.xlu0 %861 }
 0x2bd   : > { %1471 = vrcp.f32 %v862_v22 }
 0x2be   : > { %v859_v23 = vpop.xlane.xlu1 %858 }
 0x2bf   : > { %1473 = vrcp.f32 %v859_v23 }
 0x2c0   : > { %1475 = vrcp.f32 %v856_v24 }
 0x2c3   : > { %v1472_v25 = vpop.eup %1471 }
 0x2c5   : > { %v1474_v28 = vpop.eup %1473 }
 0x2c6   : > { %v1476_v30 = vpop.eup %1475 }
 0x2ce   : > { %v940_v26 = vpop.f32.mrf.mxu2 }
 0x2cf   : > { %v951_v27 = vmul.f32 %v1472_v25, %v940_v26  ;;  %v1399_v25 = vld [vmem:[%s1972_s14 + $0x18] sm:$0xff]  ;;  %v1398_v26 = vld [vmem:[%s1972_s14 + $0x10] sm:$0xff] }
 0x2d0   : > { %v921_v29 = vpop.f32.mrf.mxu1  ;;  %1152 = vmatpush.bf16.msrb.mxu1 %v1399_v25 }
 0x2d1   : > { %v950_v31 = vmul.f32 %v1474_v28, %v921_v29  ;;  %v902_v32 = vpop.f32.mrf.mxu0  ;;  %961 = vrot.lane.b32.xlu2 %v951_v27, %s1588_s20  ;;  %v1397_v27 = vld [vmem:[%s1972_s14 + $0x8] sm:$0xff]  ;;  %v1396_v28 = vld [vmem:[%s1972_s14] sm:$0xff] }
 0x2d2   : > { %v949_v33 = vmul.f32 %v1476_v30, %v902_v32 }
 0x2d3   : > { %957 = vrot.lane.b32.xlu0 %v950_v31, %s1589_s24  ;;  %s2011_s24 = sld [smem:[#allocation17_spill]] }
 0x2d4   : > { %953 = vrot.lane.b32.xlu1 %v949_v33, %s1590_s13  ;;  %1153 = vmatpush.bf16.msrb.mxu1 %v1398_v26  ;;  %s2016_s13 = sld [smem:[#allocation20_spill]] }
 0x2d6   : > { %v942_v34 = vpop.f32.mrf.mxu2 }
 0x2d8   : > { %v923_v35 = vpop.f32.mrf.mxu1  ;;  %1154 = vmatpush.bf16.msrb.mxu1 %v1397_v27 }
 0x2d9   : > { %v904_v36 = vpop.f32.mrf.mxu0  ;;  %v1459_v29 = vld [vmem:[%s2011_s24] ss:$0 sm:$0xff] }
 0x2dc   : > { %1155 = vmatpush.bf16.msrb.mxu1 %v1396_v28 }
 0x2fa   : > { %v853_v43 = vpop.xlane.xlu2 %852 }
 0x2fb   : > { %1477 = vrcp.f32 %v853_v43  ;;  %v1460_v43 = vld [vmem:[%s2012_s17] ss:$0 sm:$0xff]  ;;  %s1210_s17 = sshll.u32 %s1206_s25, 4  ;;  %s1211_s17 = int_to_ptr.hbm [resolvable:$true] %s1210_s17 }
 0x2fc   : > { %1479 = vrcp.f32 %v1591_v59  ;;  %s1531_s19 = sshra.s32 %s1211_s17, 4  ;;  %s1532_s19 = int_to_ptr.hbm [resolvable:$true] %s1531_s19 }
 0x2fd   : > { %s1533_s29 = scalar_lea.hbm %s1532_s19, 8  ;;  %p1538_p1 = scmp.lt.s32.totalorder %s1532_s19, %s2014_s2 }
 0x2fe   : > { %p1534_p6 = scmp.ne.s32.totalorder %s1532_s19, %s1533_s29  ;;  %p1539_p3 = scmp.lt.s32.totalorder %s1537_s16, %s1533_s29 }
 0x300   : > { %p1535_p13 = pnand %p1534_p6, %p1737_p11  ;;  %p1540_p4 = por %p1539_p3, %p1538_p1 }
 0x301   : > { %v1478_v44 = vpop.eup %1477 }
 0x302   : > { %v1480_v60 = vpop.eup %1479  ;;  %p1536_p0 = pneg %p1535_p13 }
 0x303   : > { %v1029_v61 = vmul.f32 32.0, %v1480_v60  ;;  %vm1033_vm6 = vweird.f32 %v1480_v60 }
 0x304   : > { %p1541_p7 = pnand %p1540_p4, %p1536_p0 }
 0x305   : > { %v1030_v62 = vsub.f32 1.0, %v1029_v61 }
 0x307   : > { %v1031_v63 = vmul.f32 %v1480_v60, %v1030_v62 }
 0x309   : > { %v1032_v0 = vadd.f32 %v1480_v60, %v1031_v63  ;;  %v1461_v63 = vld [vmem:[%s2013_s18] ss:$0 sm:$0xff] }
 0x30b   : > { %v883_v37 = vpop.f32.mrf.mxu3  ;;  %v1876_v1 = vsel %vm1033_vm6, %v1480_v60, %v1032_v0 }
 0x30c   : > { %v948_v45 = vmul.f32 %v1478_v44, %v883_v37 }
 0x313   : > { %v885_v41 = vpop.f32.mrf.mxu3 }
 0x32b   : > { %v962_v49 = vpop.permute.xlu2 %961 }
 0x345   : > { %v958_v47 = vpop.permute.xlu0 %957 }
 0x346   : > { %v954_v46 = vpop.permute.xlu1 %953 }
 0x347   : > { %v964_v48 = vsel %vm745_vm1, %v948_v45, %v954_v46 }
 0x348   : > { %v965_v50 = vsel %vm637_vm0, %v964_v48, %v958_v47 }
 0x349   : > { %v967_v51 = vsel %vm966_vm4, %v965_v50, %v962_v49 }
 0x34a   : > { %v968_v52 = vpack.c.bf16 %v967_v51, %v967_v51 }
 0x34c   : > { %1353 = vmatmul.msk.bf16.vlgmr.msra.gmra.mxu3 %vm1005_vm5, %v968_v52 }
 0x3cf   : > { %v1018_v54 = vpop.f32.mrf.mxu3 }
 0x3d0   : > { %v1019_v55 = vadd.f32 %v1456_v53, %v1018_v54 }
 0x3d2   : > { %v1022_v56 = vadd.f32 %v1019_v55, %v1800_v4 }
 0x3d4   : > { %v1025_v57 = vsel %vm637_vm0, %v1022_v56, 0.0 }
 0x3d5   : > { %1026 = vadd.xlane.f32.xlu0 %v1025_v57 }
 0x3d7   : > { %v1020_v58 = vpop.f32.mrf.mxu3 }
 0x448   : > { %v1027_v2 = vpop.xlane.xlu0 %1026 }
 0x449   : > { %v1035_v3 = vmul.f32 %v1876_v1, %v1027_v2  ;;  %v1462_v2 = vld [vmem:[%s2016_s13] ss:$0 sm:$0xff] }
 0x44b   : > { %v1036_v5 = vsub.f32 %v1022_v56, %v1035_v3 }
 0x44d   : > { %v1037_v6 = vmul.f32 %v1036_v5, %v1036_v5 }
 0x44f   : > { %v1038_v4 = vsel %vm637_vm0, %v1037_v6, 0.0 }
 0x450   : > { %1039 = vadd.xlane.f32.xlu1 %v1038_v4 }
 0x4c3   : > { %v1040_v9 = vpop.xlane.xlu1 %1039 }
 0x4c4   : > { %v1041_v10 = vmul.f32 %v1040_v9, %v1876_v1 }
 0x4c6   : > { %v1042_v11 = vadd.f32 1e-05, %v1041_v10 }
 0x4c8   : > { %1481 = vrsqrt.f32 %v1042_v11  ;;  %vm1049_vm8 = vweird.f32 %v1042_v11 }
 0x4ce   : > { %v1482_v12 = vpop.eup %1481 }
 0x4cf   : > { %v1044_v13 = vmul.f32 %v1482_v12, %v1042_v11  ;;  %vm1050_vm7 = vweird.f32 %v1482_v12 }
 0x4d0   : > { %vm1051_vm9 = vmor %vm1049_vm8, %vm1050_vm7 }
 0x4d1   : > { %v1045_v14 = vmul.f32 %v1482_v12, %v1044_v13 }
 0x4d3   : > { %v1046_v15 = vmul.f32 0.5, %v1045_v14 }
 0x4d5   : > { %v1047_v16 = vsub.f32 1.5, %v1046_v15 }
 0x4d7   : > { %v1048_v17 = vmul.f32 %v1482_v12, %v1047_v16 }
 0x4d9   : > { %v1052_v19 = vsel %vm1051_vm9, %v1482_v12, %v1048_v17 }
 0x4da   : > { %v1053_v21 = vmul.f32 %v1052_v19, %v1036_v5 }
 0x4dc   : > { %v1057_v22 = vmul.f32 %v1457_v18, %v1053_v21 }
 0x4de   : > { %v1061_v23 = vadd.f32 %v1458_v20, %v1057_v22 }
 0x4e0   : > { %v1062_v24 = vpack.c.bf16 %v1061_v23, %v1061_v23 }
 0x4e2   : > { %1362 = vmatmul.msk.bf16.vlgmr.msrb.gmra.mxu0 %vm637_vm0, %v1062_v24 }
 0x55f   : > { %v1095_v30 = vpop.f32.mrf.mxu0 }
 0x560   : > { %v1096_v31 = vadd.f32 %v1459_v29, %v1095_v30 }
 0x562   : > { %v1100_v32 = vmul.f32 0.044715, %v1096_v31  ;;  %v1099_v39 = vmul.f32 0.5, %v1096_v31 }
 0x564   : > { %v1101_v33 = vmul.f32 %v1100_v32, %v1096_v31 }
 0x566   : > { %v1102_v34 = vmul.f32 %v1101_v33, %v1096_v31 }
 0x567   : > { %v1097_v35 = vpop.f32.mrf.mxu0 }
 0x568   : > { %v1103_v36 = vadd.f32 %v1102_v34, %v1096_v31 }
 0x56a   : > { %v1104_v37 = vmul.f32 0.7978846, %v1103_v36 }
 0x56c   : > { %1483 = vtanh.f32 %v1104_v37 }
 0x572   : > { %v1484_v38 = vpop.eup %1483 }
 0x573   : > { %v1106_v40 = vadd.f32 1.0, %v1484_v38 }
 0x575   : > { %v1107_v41 = vmul.f32 %v1106_v40, %v1099_v39 }
 0x577   : > { %v1108_v42 = vpack.c.bf16 %v1107_v41, %v1107_v41 }
 0x579   : > { %1379 = vmatmul.msk.bf16.vlgmr.msrb.gmra.mxu1 %vm1005_vm5, %v1108_v42 }
 0x5f6   : > { %v1157_v44 = vpop.f32.mrf.mxu1 }
 0x5f7   : > { %v1158_v45 = vadd.f32 %v1460_v43, %v1157_v44 }
 0x5f9   : > { %v1161_v46 = vadd.f32 %v1158_v45, %v1061_v23 }
 0x5fb   : > { %v1164_v47 = vsel %vm637_vm0, %v1161_v46, 0.0 }
 0x5fc   : > { %1165 = vadd.xlane.f32.xlu2 %v1164_v47 }
 0x5fe   : > { %v1159_v48 = vpop.f32.mrf.mxu1 }
 0x66f   : > { %v1166_v49 = vpop.xlane.xlu2 %1165 }
 0x670   : > { %v1167_v50 = vmul.f32 %v1166_v49, %v1876_v1 }
 0x672   : > { %v1168_v51 = vsub.f32 %v1161_v46, %v1167_v50 }
 0x674   : > { %v1169_v52 = vmul.f32 %v1168_v51, %v1168_v51 }
 0x676   : > { %v1170_v53 = vsel %vm637_vm0, %v1169_v52, 0.0 }
 0x677   : > { %1171 = vadd.xlane.f32.xlu0 %v1170_v53 }
 0x6ea   : > { %v1172_v54 = vpop.xlane.xlu0 %1171 }
 0x6eb   : > { %v1173_v55 = vmul.f32 %v1172_v54, %v1876_v1 }
 0x6ed   : > { %v1174_v56 = vadd.f32 1e-05, %v1173_v55 }
 0x6ef   : > { %1485 = vrsqrt.f32 %v1174_v56  ;;  %vm1181_vm11 = vweird.f32 %v1174_v56 }
 0x6f5   : > { %v1486_v57 = vpop.eup %1485 }
 0x6f6   : > { %v1176_v58 = vmul.f32 %v1486_v57, %v1174_v56  ;;  %vm1182_vm10 = vweird.f32 %v1486_v57 }
 0x6f7   : > { %vm1183_vm12 = vmor %vm1181_vm11, %vm1182_vm10 }
 0x6f8   : > { %v1177_v59 = vmul.f32 %v1486_v57, %v1176_v58 }
 0x6fa   : > { %v1178_v60 = vmul.f32 0.5, %v1177_v59 }
 0x6fc   : > { %v1179_v61 = vsub.f32 1.5, %v1178_v60 }
 0x6fe   : > { %v1180_v62 = vmul.f32 %v1486_v57, %v1179_v61 }
 0x700   : > { %v1184_v0 = vsel %vm1183_vm12, %v1486_v57, %v1180_v62 }
 0x701   : > { %v1185_v1 = vmul.f32 %v1184_v0, %v1168_v51 }
 0x703   : > { %v1189_v3 = vmul.f32 %v1461_v63, %v1185_v1 }
 0x705   : > { %v1193_v5 = vadd.f32 %v1462_v2, %v1189_v3 }
 0x707   : > { %1194 = vst.msk [vmem:[%s605_s0] sm:$0xff] %vm637_vm0, %v1193_v5 }
 0x708   : > { %1544 = shalt.err (!%p1541_p7)
}
 0x709   : > { %1402 = dma.vmem_to_hbm [thread:$0]  (%p1737_p11), %s1209_s15, 128, %s1211_s17, %s1196_s21  }
 0x70a PF: > { %s2017_s26 = sld [smem:[#allocation8_spill]]  ;;  %p2019_p5 = scmp.ge.s32.totalorder %s1583_s30, 2 }
 0x70c   : > { %p1409_p8 = pnand %p2019_p5, %p1741_p12 }
 0x70e   : > { %p1410_p10 = pneg %p1409_p8 }
 0x710   : > { %s1222_s24 = sand.u32 1, %s2017_s26  }
 0x711   : > { %s1223_s13 = scalar_lea.sflag [#allocation4], %s1222_s24 }
 0x712   : > { %1566 = dma.done.wait (%p1410_p10), %s1223_s13, 128  }
 0x713   : > { %1568 = vsyncadd (%p1410_p10), %s1223_s13, 4294967168  ;;  %s2020_s30 = sld [smem:[#allocation10_spill]]  ;;  %s2023_s27 = smov %s1575_s28 }
 0x714   : > { %s2021_s0 = sld [smem:[#allocation9_spill]] }
 0x715   : > { %s2022_s29 = sld [smem:[#allocation11_spill]] }
 0x719   : > { %p31_p2 = scmp.ge.s32.totalorder %s2020_s30, 4  }
 0x71a   : > { %s2024_s28 = smov %s2021_s0 }
 0x71b   :  { %33 = sbr.rel (!%p31_p2) target bundleno = 14 (0xe), region = 140 }
 0x720   :  { %1229 = vsyncpa [#allocation3], 1 }
 0x721   :  { %1231 = vsyncpa [#allocation3 + $0x1], 1 }
 0x722   :  { %1232 = vsyncpa [#allocation4], 1 }
 0x723   :  { %1234 = vsyncpa [#allocation4 + $0x1], 1 }

</bundles_post_ra>
